<compile_context>
chip_gen: v7x
topology: tpu7x:2x2x1
jax: 0.10.0
libtpu: 0.0.40
codegen_flags: <defaults>
</compile_context>

<pallas_src>
import functools
import math

import jax
import jax.numpy as jnp
from jax.experimental import pallas as pl
from jax.experimental.pallas import tpu as pltpu


def _round_up(n, m):
    return (n + m - 1) // m * m


def _time_embed_kernel(t_ref, freq_ref, sel_ref, offs_ref,
                       w1_ref, b1_ref, w2_ref, b2_ref, o_ref):
    t = t_ref[...]                                       # (TB, 2)  f32

    # phase[b, j] = t[b, lambda(j)] * freq(j) + offs(j), offs in {0, pi/2} so a
    # single sine covers both the sin and cos halves of the torch layout.
    t_sel = jnp.where(sel_ref[...] > 0.5, t[:, 0:1], t[:, 1:2])       # (TB, D)
    phase = t_sel * freq_ref[...] + offs_ref[...]                     # (TB, D)
    feat = jnp.sin(phase)                                             # f32

    # Linear 1 + Swish (bf16 MXU inputs, f32 accumulate + f32 elementwise).
    h = jnp.dot(feat.astype(w1_ref.dtype), w1_ref[...],
                preferred_element_type=jnp.float32) + b1_ref[...]
    h = h * jax.nn.sigmoid(h)                            # Swish in f32

    # Linear 2 (no activation)
    out = jnp.dot(h.astype(w2_ref.dtype), w2_ref[...],
                  preferred_element_type=jnp.float32) + b2_ref[...]
    o_ref[...] = out.astype(o_ref.dtype)


@functools.partial(jax.jit, static_argnames=("block_b",))
def sinusoidal_time_embedding(t, w1, b1, w2, b2, *, block_b=512):
    """t: (B, 2) float32; w1: (C//2, C); b1: (1, C); w2: (C, C); b2: (1, C)."""
    B, n_lambdas = t.shape
    assert n_lambdas == 2, "module is built with n_lambdas = 2"
    D, C = w1.shape                      # D = n_channels // 2, C = n_channels
    half = C // 8

    # Column layout produced by torch Flatten(start_dim=-2) on (B, 2, 2*half):
    #   [ sin(t0*f), cos(t0*f), sin(t1*f), cos(t1*f) ], each segment `half` wide.
    denom = max(half - 1, 1)             # guard half == 1 (n_channels == 8)
    freq = jnp.exp(jnp.arange(half, dtype=jnp.float32)
                   * -(math.log(10000.0) / denom))
    freq_full = jnp.tile(freq, 4)[None, :]                            # (1, D)
    sel = jnp.concatenate([jnp.ones((2 * half,), jnp.float32),
                           jnp.zeros((2 * half,), jnp.float32)])[None, :]
    halfpi = jnp.full((half,), math.pi / 2.0, jnp.float32)
    zero = jnp.zeros((half,), jnp.float32)
    offs = jnp.concatenate([zero, halfpi, zero, halfpi])[None, :]     # (1, D)

    # bf16 weights for the MXU; biases stay f32.
    w1b = w1.astype(jnp.bfloat16)
    w2b = w2.astype(jnp.bfloat16)

    # Batch tile: multiple of 8 sublanes, and split into >= 2 grid steps when
    # possible so the "parallel" batch axis shards across both v7x TCs.
    tb = min(block_b, _round_up(B, 8))
    if B > 8 and pl.cdiv(B, tb) < 2:
        tb = _round_up(pl.cdiv(B, 2), 8)
    grid = (pl.cdiv(B, tb),)

    # Resident (fetched-once) operands: single-buffer them.
    def const_spec(shape):
        return pl.BlockSpec(shape, lambda i: (0, 0), pipeline_mode=pl.Buffered(1))

    # VMEM budget (weights single-buffered, streamed tiles double-buffered,
    # plus the f32 feat/h intermediates), clamped to fit v7x's 64 MiB.
    weight_bytes = (D * C + C * C) * 2 + 2 * C * 4 + 3 * D * 4
    stream_bytes = 2 * (tb * 2 * 4 + tb * C * 4)
    live_bytes = tb * (D + 2 * C) * 4
    vmem_limit = min(64 * 1024 * 1024,
                     max(32 * 1024 * 1024,
                         int(1.5 * (weight_bytes + stream_bytes + live_bytes))))

    cost = pl.CostEstimate(
        flops=2 * B * (D * C + C * C),
        transcendentals=B * (D + C),               # sin + sigmoid
        bytes_accessed=(B * 2 * 4 + B * C * 4      # t in, out
                        + (D * C + C * C) * 2      # bf16 weights
                        + 2 * C * 4 + 3 * D * 4),  # biases + constants
    )

    out = pl.pallas_call(
        _time_embed_kernel,
        out_shape=jax.ShapeDtypeStruct((B, C), jnp.float32),
        grid=grid,
        in_specs=[
            pl.BlockSpec((tb, 2), lambda i: (i, 0)),   # t   (streamed per tile)
            const_spec((1, D)),                        # freq_full (resident)
            const_spec((1, D)),                        # lambda selector
            const_spec((1, D)),                        # {0, pi/2} phase offsets
            const_spec((D, C)),                        # W1 (resident)
            const_spec((1, C)),                        # b1
            const_spec((C, C)),                        # W2 (resident)
            const_spec((1, C)),                        # b2
        ],
        out_specs=pl.BlockSpec((tb, C), lambda i: (i, 0)),
        compiler_params=pltpu.CompilerParams(
            dimension_semantics=("parallel",),
            vmem_limit_bytes=vmem_limit),
        cost_estimate=cost,
    )(t.astype(jnp.float32), freq_full, sel, offs, w1b, b1, w2b, b2)
    return out


def init_params(key, n_channels):
    """PyTorch nn.Linear default init, weights stored (in, out)."""
    k1, k2, k3, k4 = jax.random.split(key, 4)

    def linear(kw, kb, fan_in, fan_out):
        bound = 1.0 / math.sqrt(fan_in)
        w = jax.random.uniform(kw, (fan_in, fan_out), jnp.float32, -bound, bound)
        b = jax.random.uniform(kb, (1, fan_out), jnp.float32, -bound, bound)
        return w, b

    w1, b1 = linear(k1, k2, n_channels // 2, n_channels)
    w2, b2 = linear(k3, k4, n_channels, n_channels)
    return w1, b1, w2, b2


def reference_forward(t, w1, b1, w2, b2):
    """Pure-JAX (f32) reference of the PyTorch forward pass."""
    C = w2.shape[1]
    half = C // 8
    freq = jnp.exp(jnp.arange(half, dtype=jnp.float32)
                   * -(math.log(10000.0) / (half - 1)))
    emb = t[..., None] * freq[None, None, :]                  # (B, 2, half)
    emb = jnp.concatenate([jnp.sin(emb), jnp.cos(emb)], -1)   # (B, 2, 2*half)
    emb = emb.reshape(t.shape[0], -1)                         # (B, C//2)
    h = emb @ w1 + b1
    h = h * jax.nn.sigmoid(h)                                 # Swish
    return h @ w2 + b2


if __name__ == "__main__":
    n_channels = 128     # half = 16, flattened feature dim D = 64, C = 128
    batch = 32

    key = jax.random.PRNGKey(0)
    kp, kt = jax.random.split(key)
    w1, b1, w2, b2 = init_params(kp, n_channels)
    # two conditioning scalars ("lambdas") per sample
    t = jax.random.uniform(kt, (batch, 2), jnp.float32, 0.0, 4.0)

    out = sinusoidal_time_embedding(t, w1, b1, w2, b2)
    out = jax.block_until_ready(out)

    ref = reference_forward(t, w1, b1, w2, b2)
    assert out.shape == (batch, n_channels)
    # bf16 matmul inputs vs f32 reference -> loosened tolerance
    assert jnp.allclose(out, ref, atol=2e-2, rtol=2e-2), (
        f"mismatch vs reference, max abs err = {jnp.max(jnp.abs(out - ref))}")

    print("KERNEL_OK")
</pallas_src>

<mosaic_0001>
module attributes {stable_mosaic.version = 11 : i64} {
  func.func @_time_embed_kernel(%arg0: i32, %arg1: memref<16x2xf32, #tpu.memory_space<vmem>>, %arg2: memref<1x64xf32, #tpu.memory_space<vmem>>, %arg3: memref<1x64xf32, #tpu.memory_space<vmem>>, %arg4: memref<1x64xf32, #tpu.memory_space<vmem>>, %arg5: memref<64x128xbf16, #tpu.memory_space<vmem>>, %arg6: memref<1x128xf32, #tpu.memory_space<vmem>>, %arg7: memref<128x128xbf16, #tpu.memory_space<vmem>>, %arg8: memref<1x128xf32, #tpu.memory_space<vmem>>, %arg9: memref<16x128xf32, #tpu.memory_space<vmem>>) attributes {dimension_semantics = [#tpu.dimension_semantics<parallel>], iteration_bounds = array<i64: 2>, scalar_prefetch = 0 : i64, scratch_operands = 0 : i64, tpu.core_type = #tpu.core_type<tc>, window_params = [{transform_indices = @transform_0, window_bounds = array<i64: 16, 2>}, {pipeline_mode = #tpu.pipeline_mode<synchronous>, transform_indices = @transform_1, window_bounds = array<i64: 1, 64>}, {pipeline_mode = #tpu.pipeline_mode<synchronous>, transform_indices = @transform_2, window_bounds = array<i64: 1, 64>}, {pipeline_mode = #tpu.pipeline_mode<synchronous>, transform_indices = @transform_3, window_bounds = array<i64: 1, 64>}, {pipeline_mode = #tpu.pipeline_mode<synchronous>, transform_indices = @transform_4, window_bounds = array<i64: 64, 128>}, {pipeline_mode = #tpu.pipeline_mode<synchronous>, transform_indices = @transform_5, window_bounds = array<i64: 1, 128>}, {pipeline_mode = #tpu.pipeline_mode<synchronous>, transform_indices = @transform_6, window_bounds = array<i64: 128, 128>}, {pipeline_mode = #tpu.pipeline_mode<synchronous>, transform_indices = @transform_7, window_bounds = array<i64: 1, 128>}, {transform_indices = @transform_8, window_bounds = array<i64: 16, 128>}]} {
    %c0 = arith.constant 0 : index
    %c0_0 = arith.constant 0 : index
    %0 = vector.load %arg1[%c0, %c0_0] : memref<16x2xf32, #tpu.memory_space<vmem>>, vector<16x2xf32>
    %c0_1 = arith.constant 0 : index
    %c0_2 = arith.constant 0 : index
    %1 = vector.load %arg3[%c0_1, %c0_2] : memref<1x64xf32, #tpu.memory_space<vmem>>, vector<1x64xf32>
    %cst = arith.constant 5.000000e-01 : f32
    %2 = vector.broadcast %cst : f32 to vector<1x64xf32>
    %3 = arith.cmpf ogt, %1, %2 : vector<1x64xf32>
    %4 = vector.extract_strided_slice %0 {offsets = [0, 0], sizes = [16, 1], strides = [1, 1]} : vector<16x2xf32> to vector<16x1xf32>
    %5 = vector.extract_strided_slice %0 {offsets = [0, 1], sizes = [16, 1], strides = [1, 1]} : vector<16x2xf32> to vector<16x1xf32>
    %6 = vector.shape_cast %3 : vector<1x64xi1> to vector<1x64xi1>
    %7 = vector.broadcast %6 : vector<1x64xi1> to vector<16x64xi1>
    %8 = vector.shape_cast %4 : vector<16x1xf32> to vector<16x1xf32>
    %9 = vector.broadcast %8 : vector<16x1xf32> to vector<16x64xf32>
    %10 = vector.shape_cast %5 : vector<16x1xf32> to vector<16x1xf32>
    %11 = vector.broadcast %10 : vector<16x1xf32> to vector<16x64xf32>
    %12 = arith.select %7, %9, %11 : vector<16x64xi1>, vector<16x64xf32>
    %c0_3 = arith.constant 0 : index
    %c0_4 = arith.constant 0 : index
    %13 = vector.load %arg2[%c0_3, %c0_4] : memref<1x64xf32, #tpu.memory_space<vmem>>, vector<1x64xf32>
    %14 = vector.broadcast %13 : vector<1x64xf32> to vector<16x64xf32>
    %15 = arith.mulf %12, %14 : vector<16x64xf32>
    %c0_5 = arith.constant 0 : index
    %c0_6 = arith.constant 0 : index
    %16 = vector.load %arg4[%c0_5, %c0_6] : memref<1x64xf32, #tpu.memory_space<vmem>>, vector<1x64xf32>
    %17 = vector.broadcast %16 : vector<1x64xf32> to vector<16x64xf32>
    %18 = arith.addf %15, %17 : vector<16x64xf32>
    %19 = math.sin %18 : vector<16x64xf32>
    %20 = arith.truncf %19 : vector<16x64xf32> to vector<16x64xbf16>
    %c0_7 = arith.constant 0 : index
    %c0_8 = arith.constant 0 : index
    %21 = vector.load %arg5[%c0_7, %c0_8] : memref<64x128xbf16, #tpu.memory_space<vmem>>, vector<64x128xbf16>
    %cst_9 = arith.constant dense<0.000000e+00> : vector<16x128xf32>
    %22 = tpu.matmul %20, %21, %cst_9 {dimension_numbers = #tpu.dot_dimension_numbers<[1], [0], [0], [1], [0, 0, 1, 1], [], []>} : vector<16x64xbf16>, vector<64x128xbf16>, vector<16x128xf32> -> vector<16x128xf32>
    %c0_10 = arith.constant 0 : index
    %c0_11 = arith.constant 0 : index
    %23 = vector.load %arg6[%c0_10, %c0_11] : memref<1x128xf32, #tpu.memory_space<vmem>>, vector<1x128xf32>
    %24 = vector.broadcast %23 : vector<1x128xf32> to vector<16x128xf32>
    %25 = arith.addf %22, %24 : vector<16x128xf32>
    %26 = arith.negf %25 : vector<16x128xf32>
    %27 = math.exp %26 : vector<16x128xf32>
    %cst_12 = arith.constant 1.000000e+00 : f32
    %28 = vector.broadcast %cst_12 : f32 to vector<16x128xf32>
    %29 = arith.addf %28, %27 : vector<16x128xf32>
    %30 = arith.divf %28, %29 : vector<16x128xf32>
    %31 = arith.mulf %25, %30 : vector<16x128xf32>
    %32 = arith.truncf %31 : vector<16x128xf32> to vector<16x128xbf16>
    %c0_13 = arith.constant 0 : index
    %c0_14 = arith.constant 0 : index
    %33 = vector.load %arg7[%c0_13, %c0_14] : memref<128x128xbf16, #tpu.memory_space<vmem>>, vector<128x128xbf16>
    %cst_15 = arith.constant dense<0.000000e+00> : vector<16x128xf32>
    %34 = tpu.matmul %32, %33, %cst_15 {dimension_numbers = #tpu.dot_dimension_numbers<[1], [0], [0], [1], [0, 0, 1, 1], [], []>} : vector<16x128xbf16>, vector<128x128xbf16>, vector<16x128xf32> -> vector<16x128xf32>
    %c0_16 = arith.constant 0 : index
    %c0_17 = arith.constant 0 : index
    %35 = vector.load %arg8[%c0_16, %c0_17] : memref<1x128xf32, #tpu.memory_space<vmem>>, vector<1x128xf32>
    %36 = vector.broadcast %35 : vector<1x128xf32> to vector<16x128xf32>
    %37 = arith.addf %34, %36 : vector<16x128xf32>
    %c0_18 = arith.constant 0 : index
    %c0_19 = arith.constant 0 : index
    %38 = vector.load %arg9[%c0_18, %c0_19] : memref<16x128xf32, #tpu.memory_space<vmem>>, vector<16x128xf32>
    tpu.vector_store %arg9[%c0_18, %c0_19], %37 {strides = array<i32>} : memref<16x128xf32, #tpu.memory_space<vmem>>, vector<16x128xf32>,
    return
  }
  func.func @transform_0(%arg0: i32) -> (i32, i32) {
    %c0_i32 = arith.constant 0 : i32
    %c0_i32_0 = arith.constant 0 : i32
    return %arg0, %c0_i32 : i32, i32
  }
  func.func @transform_1(%arg0: i32) -> (i32, i32) {
    %c0_i32 = arith.constant 0 : i32
    %c0_i32_0 = arith.constant 0 : i32
    %c0_i32_1 = arith.constant 0 : i32
    return %c0_i32, %c0_i32_0 : i32, i32
  }
  func.func @transform_2(%arg0: i32) -> (i32, i32) {
    %c0_i32 = arith.constant 0 : i32
    %c0_i32_0 = arith.constant 0 : i32
    %c0_i32_1 = arith.constant 0 : i32
    return %c0_i32, %c0_i32_0 : i32, i32
  }
  func.func @transform_3(%arg0: i32) -> (i32, i32) {
    %c0_i32 = arith.constant 0 : i32
    %c0_i32_0 = arith.constant 0 : i32
    %c0_i32_1 = arith.constant 0 : i32
    return %c0_i32, %c0_i32_0 : i32, i32
  }
  func.func @transform_4(%arg0: i32) -> (i32, i32) {
    %c0_i32 = arith.constant 0 : i32
    %c0_i32_0 = arith.constant 0 : i32
    %c0_i32_1 = arith.constant 0 : i32
    return %c0_i32, %c0_i32_0 : i32, i32
  }
  func.func @transform_5(%arg0: i32) -> (i32, i32) {
    %c0_i32 = arith.constant 0 : i32
    %c0_i32_0 = arith.constant 0 : i32
    %c0_i32_1 = arith.constant 0 : i32
    return %c0_i32, %c0_i32_0 : i32, i32
  }
  func.func @transform_6(%arg0: i32) -> (i32, i32) {
    %c0_i32 = arith.constant 0 : i32
    %c0_i32_0 = arith.constant 0 : i32
    %c0_i32_1 = arith.constant 0 : i32
    return %c0_i32, %c0_i32_0 : i32, i32
  }
  func.func @transform_7(%arg0: i32) -> (i32, i32) {
    %c0_i32 = arith.constant 0 : i32
    %c0_i32_0 = arith.constant 0 : i32
    %c0_i32_1 = arith.constant 0 : i32
    return %c0_i32, %c0_i32_0 : i32, i32
  }
  func.func @transform_8(%arg0: i32) -> (i32, i32) {
    %c0_i32 = arith.constant 0 : i32
    %c0_i32_0 = arith.constant 0 : i32
    return %arg0, %c0_i32 : i32, i32
  }
}

</mosaic_0001>

<bundles_post_ra>
// kernel: tile.8
= control target key start
LH: loop header
LB: loop body
LE: loop exit
PB: predicated region body
PF: predicated region fallthrough
CT: control target
= control target key end

     0   :  { %s22_s0 = inlined_call_operand.vmem [shape: f32[16], index: 0, kind: input, shape index: {}]   ;;  %s23_s1 = inlined_call_operand.vmem [shape: f32[4,16], index: 1, kind: output, shape index: {}]  }
   0x1   :  { %v4_v0 = vld [vmem:[%s22_s0] ss:$0 sm:$0xff] }
   0x2   :  { %5 = vst [vmem:[%s23_s1] sm:$0xf] %v4_v0 }

// kernel: tile.9
= control target key start
LH: loop header
LB: loop body
LE: loop exit
PB: predicated region body
PF: predicated region fallthrough
CT: control target
= control target key end

     0   :  { %vm7_vm0 = vcmask 130048   ;;  %s37_s8 = smov 16   ;;  %s38_s9 = smov 32   ;;  %vm13_vm1 = vcmask 523648   ;;  %vm19_vm2 = vcmask 392448   ;;  %vm25_vm3 = vcmask 261248   ;;  %s55_s0 = inlined_call_operand.vmem [shape: f32[4,16], index: 0, kind: input, shape index: {}]   ;;  %s56_s1 = inlined_call_operand.vmem [shape: f32[1,64], index: 1, kind: output, shape index: {}]  }
   0x1   :  { %v4_v0 = vld [vmem:[%s55_s0] sm:$0xf]  ;;  %s36_s0 = smov 48  }
   0x2   :  { %5 = vst [vmem:[#allocation1] sm:$0xf] %v4_v0 }
   0x9   :  { %v10_v1 = vld [vmem:[#allocation1 + $0x3] sm:$0x1]   ;;  %v22_v2 = vld [vmem:[#allocation1 + $0x1] sm:$0x1]   ;;  %v6_v3 = vld [vmem:[#allocation1] sm:$0x1]  }
   0xa   :  { %11 = vrot.lane.b32.xlu0 %v10_v1, %s36_s0  ;;  %23 = vrot.lane.b32.xlu1 %v22_v2, %s37_s8  ;;  %v16_v4 = vld [vmem:[#allocation1 + $0x2] sm:$0x1]   ;;  %8 = vst.msk [vmem:[#allocation0] sm:$0x1] %vm7_vm0, %v6_v3  }
   0xe   :  { %17 = vrot.lane.b32.xlu0 %v16_v4, %s38_s9 }
  0x7c   :  { %v12_v5 = vpop.permute.xlu0 %11   ;;  %v24_v6 = vpop.permute.xlu1 %23  }
  0x7d   :  { %14 = vst.msk [vmem:[#allocation0] sm:$0x1] %vm13_vm1, %v12_v5  }
  0x80   :  { %v18_v7 = vpop.permute.xlu0 %17  }
  0x81   :  { %20 = vst.msk [vmem:[#allocation0] sm:$0x1] %vm19_vm2, %v18_v7  }
  0x82   :  { %26 = vst.msk [vmem:[#allocation0] sm:$0x1] %vm25_vm3, %v24_v6  }
  0x89   :  { %v30_v8 = vld [vmem:[#allocation0] sm:$0x1] }
  0x8a   :  { %32 = vst [vmem:[%s56_s1] sm:$0x1] %v30_v8 }

// kernel: sinusoidal_time_embedding.1
= control target key start
LH: loop header
LB: loop body
LE: loop exit
PB: predicated region body
PF: predicated region fallthrough
CT: control target
= control target key end

     0   :  { %13 = vsyncpa [#allocation3], 0  ;;  %s1387_s0 = inlined_call_operand.vmem [shape: f32[32,2], index: 0, kind: input, shape index: {}]   ;;  %s1388_s1 = inlined_call_operand.vmem [shape: f32[1,64], index: 1, kind: input, shape index: {}]   ;;  %s1389_s2 = inlined_call_operand.vmem [shape: f32[1,64], index: 2, kind: input, shape index: {}]   ;;  %s1390_s3 = inlined_call_operand.vmem [shape: f32[1,64], index: 3, kind: input, shape index: {}]   ;;  %s1391_s4 = inlined_call_operand.vmem [shape: bf16[64,128], index: 4, kind: input, shape index: {}]   ;;  %s1392_s5 = inlined_call_operand.vmem [shape: f32[1,128], index: 5, kind: input, shape index: {}]   ;;  %s1393_s6 = inlined_call_operand.vmem [shape: bf16[128,128], index: 6, kind: input, shape index: {}]   ;;  %s1394_s7 = inlined_call_operand.vmem [shape: f32[1,128], index: 7, kind: input, shape index: {}]   ;;  %s1395_s8 = inlined_call_operand.hbm [shape: f32[32,128], index: 8, kind: output, shape index: {}]  }
   0x1   :  { %15 = vsyncpa [#allocation3 + $0x1], 0  ;;  %s1152_s27 = smov 0   ;;  %s1154_s28 = smov 0  }
   0x2   :  { %s1156_s29 = smov 0   ;;  %s1158_s30 = smov 0  }
   0x3 LB: > { %s1173_s9 = sadd.s32 4294967295, %s1092_s30   ;;  %s854_s10 = sadd.s32 4294967294, %s1092_s30   ;;  %s1092_s30 = sphi %s1158_s30, %s1403_s30   ;;  %s1088_s29 = sphi %s1156_s29, %s1402_s29   ;;  %s1084_s28 = sphi %s1154_s28, %s1401_s28   ;;  %s1080_s27 = sphi %s1152_s27, %s1400_s27  }
   0x4   : > { %s1177_s11 = sadd.s32 1, %s1092_s30   ;;  %s201_s12 = sadd.s32 1, %s1088_s29 }
   0x5   : > { %s198_s13 = ssub.s32 %s1092_s30, %s1177_s11  ;;  %p211_p0 = scmp.ne.s32.totalorder %s1088_s29, %s1084_s28 }
   0x6   : > { %p199_p1 = scmp.eq.s32.totalorder %s198_s13, 0  ;;  %p212_p2 = scmp.eq.s32.totalorder %s1173_s9, 1 }
   0x7   : > { %p217_p3 = scmp.ne.s32.totalorder %s1084_s28, %s1080_s27  ;;  %p218_p4 = scmp.eq.s32.totalorder %s854_s10, 1 }
   0x8   : > { %s1188_s14 = scalar_select %p199_p1, %s1088_s29, %s201_s12  }
   0x9   : > { %p1190_p5 = por %p212_p2, %p211_p0  ;;  %p1194_p6 = por %p218_p4, %p217_p3 }
   0xa   : > { %p857_p7 = scmp.ge.s32.totalorder %s1092_s30, 1  ;;  %p266_p8 = scmp.lt.s32.totalorder %s1092_s30, 3 }
   0xc   : > { %p267_p9 = pnand %p857_p7, %p266_p8 }
   0xd   : > { %s859_s17 = sshll.u32 (!%p267_p9), %s1173_s9, 1  ;;  %v1094_v0 = vmov (!%p267_p9), 1   ;;  %v1095_v1 = vmov (!%p267_p9), 0   ;;  %v1002_v4 = vld [vmem:[%s1391_s4] sm:$0xff] (!%p267_p9)   ;;  %v1096_v5 = vmov (!%p267_p9), 0.0   ;;  %vm1097_vm0 = vmmov (!%p267_p9), 0  }
   0xe   : > { %270 = sbr.rel (%p267_p9) target bundleno = 727 (0x2d7), region = 52  ;;  %1000 = vset.pattern.permute.xlu1 (!%p267_p9), %v1094_v0  ;;  %999 = vset.pattern.permute.xlu0 (!%p267_p9), %v1095_v1  ;;  %p301_p10 = scmp.lt.s32.totalorder (!%p267_p9), %s859_s17, 3  ;;  %v1003_v6 = vld [vmem:[%s1391_s4 + $0x8] sm:$0xff] (!%p267_p9)   ;;  %v1004_v7 = vld [vmem:[%s1391_s4 + $0x10] sm:$0xff] (!%p267_p9)   ;;  %v1005_v8 = vld [vmem:[%s1391_s4 + $0x18] sm:$0xff] (!%p267_p9)   ;;  %v313_v9 = vlaneseq (!%p267_p9) }
   0xf   : > { %908 = vmatprep.subr.bf16.mxu0 (!%p267_p9), %v1096_v5  ;;  %916 = vmatprep.mubr.msk.bf16.mxu0 (!%p267_p9), %vm1097_vm0, %v1096_v5  ;;  %v310_v10 = vld [vmem:[%s1389_s2] sm:$0x1] (!%p267_p9)  ;;  %v1098_v43 = vmov (!%p267_p9), 683565275   ;;  %v1099_v47 = vmov (!%p267_p9), 2475754826  }
  0x10   : > { %909 = vmatpush3.bf16.msra.mxu0 (!%p267_p9), %v1002_v4  ;;  %920 = vmatprep.subr.bf16.mxu1 (!%p267_p9), %v1096_v5  ;;  %v314_v11 = vshrl.u32 (!%p267_p9), %v313_v9, 7  ;;  %vm311_vm1 = vcmp.gt.f32.partialorder (!%p267_p9), %v310_v10, 0.5  ;;  %v861_v15 = vld [vmem:[%s1388_s1] ss:$0 sm:$0xff] (!%p267_p9)  ;;  %v1100_v49 = vmov (!%p267_p9), 2131351028  }
  0x11   : > { %910 = vmatprep.subr.bf16.mxu0 (!%p267_p9), %v1096_v5  ;;  %936 = vmatprep.mubr.msk.bf16.mxu1 (!%p267_p9), %vm1097_vm0, %v1096_v5  ;;  %v312_v13 = vsel (!%p267_p9), %vm311_vm1, 1, %v1095_v1  ;;  %v862_v18 = vld [vmem:[%s1390_s3] ss:$0 sm:$0xff] (!%p267_p9)  ;;  %v1101_v51 = vmov (!%p267_p9), 2102212464   ;;  %s297_s12 = sand.u32 (!%p267_p9), 1, %s1084_s28  }
  0x12   : > { %v315_v12 = vsub.s32 (!%p267_p9), 0, %v314_v11  ;;  %v1102_v53 = vmov (!%p267_p9), 920167782   ;;  %v1103_v60 = vmov (!%p267_p9), 1326507024   ;;  %s858_s13 = sshll.u32 (!%p267_p9), %s297_s12, 4 }
  0x13   : > { %s299_s19 = scalar_lea.vmem (!%p267_p9), [#allocation2], %s858_s13  ;;  %s1346_s25 = scalar_lea.sflag (!%p267_p9), [#allocation3], %s297_s12 }
  0x14   : > { %911 = vmatpush3.bf16.msra.mxu0 (!%p267_p9), %v1003_v6  ;;  %v316_v14 = vrot.slane (!%p267_p9), %v312_v13, %v315_v12  ;;  %s792_s20 = sshll.u32 (!%p267_p9), %s299_s19, 4  ;;  %s1104_s26 = smov (!%p267_p9), [#allocation2]   ;;  %s1339_s20 = int_to_ptr.vmem [resolvable:$true] %s792_s20 }
  0x15   : > { %s1405_s17 = smov (!%p301_p10, %s859_s17), 3  ;;  %912 = vmatprep.subr.bf16.mxu0 %v1096_v5  ;;  %s1034_s10 = sshll.u32 %s1104_s26, 4  ;;  %s1035_s10 = int_to_ptr.vmem [resolvable:$false] %s1034_s10 }
  0x16   : > { %s860_s18 = sshll.u32 %s1405_s17, 3  ;;  %vm317_vm2 = vcmp.eq.s32.totalorder %v316_v14, 1  ;;  %s1036_s13 = scalar_lea.vmem %s1035_s10, 512 }
  0x17   : > { %s304_s21 = scalar_lea.vmem %s1387_s0, %s860_s18  ;;  %p1037_p0 = scmp.lt.s32.totalorder %s1339_s20, %s1035_s10 }
  0x18   : > { %v308_v2 = vld [vmem:[%s304_s21] sm:$0xff]  ;;  %v309_v3 = vld [vmem:[%s304_s21 + $0x8] sm:$0xff]  ;;  %913 = vmatpush3.bf16.msra.mxu0 %v1004_v7  ;;  %s893_s21 = sshll.u32 %s1173_s9, 8  ;;  %s1030_s9 = scalar_lea.vmem %s1339_s20, 256 }
  0x19   : > { %329 = vperm.xlu1 %1000, %v308_v2   ;;  %320 = vperm.xlu0 %999, %v308_v2   ;;  %s1344_s24 = scalar_lea.hbm %s1395_s8, %s893_s21  ;;  %p1031_p11 = scmp.ne.s32.totalorder %s1339_s20, %s1030_s9 }
  0x1a   : > { %914 = vmatprep.subr.bf16.mxu0 %v1096_v5  ;;  %p1038_p1 = scmp.lt.s32.totalorder %s1036_s13, %s1030_s9 }
  0x1b   : > { %p1032_p12 = pnand %p1031_p11, %p1190_p5 }
  0x1c   : > { %915 = vmatpush3.bf16.msra.mxu0 %v1005_v8  ;;  %p1039_p2 = por %p1038_p1, %p1037_p0 }
  0x1d   : > { %333 = vperm.xlu1 %1000, %v309_v3   ;;  %325 = vperm.xlu0 %999, %v309_v3   ;;  %p1033_p13 = pneg %p1032_p12 }
  0x1f   : > { %p1040_p3 = pnand %p1039_p2, %p1033_p13 }
  0x21   : > { %1001 = vset.pattern.permute.xlu0 %v1094_v0 }
  0x98   : > { %v330_v16 = vpop.permute.xlu1 %329  ;;  %v321_v17 = vpop.permute.xlu0 %320 }
  0x99   : > { %v336_v19 = vsel %vm317_vm2, %v321_v17, %v330_v16 }
  0x9a   : > { %v345_v20 = vmul.f32 %v861_v15, %v336_v19 }
  0x9c   : > { %v1232_v21 = vadd.f32 %v862_v18, %v345_v20  ;;  %v334_v22 = vpop.permute.xlu1 %333  ;;  %v326_v23 = vpop.permute.xlu0 %325 }
  0x9d   : > { %v337_v24 = vsel %vm317_vm2, %v326_v23, %v334_v22 }
  0x9e   : > { %v356_v25 = vand.u32 2147483647, %v1232_v21  ;;  %v359_v26 = vand.u32 2139095040, %v1232_v21  ;;  %v346_v27 = vmul.f32 %v861_v15, %v337_v24  ;;  %vm358_vm1 = vcmp.lt.s32.totalorder %v1232_v21, 0 }
  0xa0   : > { %v360_v28 = vshrl.u32 %v359_v26, 23  ;;  %v1236_v29 = vadd.f32 %v862_v18, %v346_v27  ;;  %v363_v30 = vand.u32 8388607, %v356_v25  ;;  %vm357_vm2 = vcmp.le.f32.partialorder %v356_v25, 0.7853982 }
  0xa2   : > { %v863_v31 = vadd.s32 4294967169, %v360_v28  ;;  %v463_v32 = vand.u32 2139095040, %v1236_v29  ;;  %v364_v34 = vor.u32 8388608, %v363_v30  ;;  %v460_v36 = vand.u32 2147483647, %v1236_v29 }
  0xa4   : > { %v366_v33 = vadd.s32 1, %v863_v31  ;;  %v464_v35 = vshrl.u32 %v463_v32, 23  ;;  %v1242_v41 = vshll.u32 %v364_v34, 8  ;;  %v467_v45 = vand.u32 8388607, %v460_v36 }
  0xa6   : > { %vm367_vm3 = vcmp.gt.s32.totalorder %v366_v33, 0  ;;  %v867_v38 = vadd.s32 4294967169, %v464_v35  ;;  %v468_v12 = vor.u32 8388608, %v467_v45 }
  0xa7   : > { %v368_v37 = vsel %vm367_vm3, %v366_v33, 0  ;;  %vm462_vm3 = vcmp.lt.s32.totalorder %v1236_v29, 0 }
  0xa8   : > { %v369_v39 = vshrl.u32 %v368_v37, 5  ;;  %v370_v40 = vand.u32 31, %v368_v37  ;;  %v470_v46 = vadd.s32 1, %v867_v38  ;;  %v508_v27 = vshll.u32 %v468_v12, 8 }
  0xaa   : > { %v371_v42 = vsub.s32 32, %v370_v40  ;;  %v373_v44 = vshll.u32 %v1098_v43, %v370_v40  ;;  %v376_v48 = vshll.u32 %v1099_v47, %v370_v40  ;;  %v379_v50 = vshll.u32 %v1100_v49, %v370_v40 }
  0xab   : > { %v382_v52 = vshll.u32 %v1101_v51, %v370_v40  ;;  %v385_v54 = vshll.u32 %v1102_v53, %v370_v40  ;;  %vm388_vm4 = vcmp.lt.s32.totalorder %v369_v39, 1  ;;  %vm390_vm5 = vcmp.lt.s32.totalorder %v369_v39, 3 }
  0xac   : > { %v374_v55 = vshrl.u32 %v1099_v47, %v371_v42  ;;  %v377_v56 = vshrl.u32 %v1100_v49, %v371_v42  ;;  %v380_v57 = vshrl.u32 %v1101_v51, %v371_v42  ;;  %v372_v58 = vshrl.u32 %v1098_v43, %v371_v42 }
  0xad   : > { %v383_v59 = vshrl.u32 %v1102_v53, %v371_v42  ;;  %v386_v61 = vshrl.u32 %v1103_v60, %v371_v42  ;;  %vm471_vm6 = vcmp.gt.s32.totalorder %v470_v46, 0  ;;  %vm391_vm7 = vcmp.lt.s32.totalorder %v369_v39, 4 }
  0xae   : > { %v375_v62 = vor.u32 %v374_v55, %v373_v44  ;;  %v378_v63 = vor.u32 %v377_v56, %v376_v48  ;;  %v381_v0 = vor.u32 %v380_v57, %v379_v50  ;;  %v472_v3 = vsel %vm471_vm6, %v470_v46, 0 }
  0xaf   : > { %v384_v1 = vor.u32 %v383_v59, %v382_v52  ;;  %v387_v2 = vor.u32 %v386_v61, %v385_v54  ;;  %vm389_vm8 = vcmp.lt.s32.totalorder %v369_v39, 2  ;;  %v474_v15 = vand.u32 31, %v472_v3 }
  0xb0   : > { %v392_v4 = vsel %vm388_vm4, %v372_v58, %v375_v62  ;;  %v393_v6 = vsel %vm391_vm7, %v381_v0, 2102212464  ;;  %v396_v7 = vsel %vm388_vm4, %v375_v62, %v378_v63  ;;  %v400_v8 = vsel %vm388_vm4, %v378_v63, %v381_v0 }
  0xb1   : > { %v394_v9 = vsel %vm390_vm5, %v378_v63, %v393_v6  ;;  %v397_v10 = vsel %vm391_vm7, %v384_v1, 920167782  ;;  %v401_v11 = vsel %vm391_vm7, %v387_v2, 1326507024  ;;  %v473_v24 = vshrl.u32 %v472_v3, 5 }
  0xb2   : > { %v398_v13 = vsel %vm390_vm5, %v381_v0, %v397_v10  ;;  %v402_v14 = vsel %vm390_vm5, %v384_v1, %v401_v11  ;;  %v395_v16 = vsel %vm389_vm8, %v392_v4, %v394_v9  ;;  %v475_v26 = vsub.s32 32, %v474_v15 }
  0xb3   : > { %v399_v17 = vsel %vm389_vm8, %v396_v7, %v398_v13  ;;  %v403_v18 = vsel %vm389_vm8, %v400_v8, %v402_v14  ;;  %v411_v28 = vmul.u32 %v1242_v41, %v395_v16  ;;  %v477_v30 = vshll.u32 %v1098_v43, %v474_v15 }
  0xb4   : > { %v1255_v19 = vmul.u32.u64.low %v1242_v41, %v403_v18  ;;  %v1256_v20 = vmul.u32.u64.high %v1242_v41, %v403_v18, %v1255_v19  ;;  %v1259_v22 = vmul.u32.u64.low %v1242_v41, %v399_v17  ;;  %v1260_v23 = vmul.u32.u64.high %v1242_v41, %v399_v17, %v1259_v22 }
  0xb5   : > { %v480_v31 = vshll.u32 %v1099_v47, %v474_v15  ;;  %v483_v32 = vshll.u32 %v1100_v49, %v474_v15  ;;  %v478_v33 = vshrl.u32 %v1099_v47, %v475_v26  ;;  %v481_v34 = vshrl.u32 %v1100_v49, %v475_v26 }
  0xb6   : > { %v484_v35 = vshrl.u32 %v1101_v51, %v475_v26  ;;  %v486_v37 = vshll.u32 %v1101_v51, %v474_v15  ;;  %vm413_vm9 = vc.u32 %v1256_v20, %v1259_v22  ;;  %v414_v38 = vadd.s32 1, %v1260_v23 }
  0xb7   : > { %v487_v39 = vshrl.u32 %v1102_v53, %v475_v26  ;;  %v489_v40 = vshll.u32 %v1102_v53, %v474_v15  ;;  %v479_v42 = vor.u32 %v478_v33, %v477_v30  ;;  %v482_v44 = vor.u32 %v481_v34, %v480_v31 }
  0xb8   : > { %v485_v45 = vor.u32 %v484_v35, %v483_v32  ;;  %v490_v46 = vshrl.u32 %v1103_v60, %v475_v26  ;;  %v415_v41 = vsel %vm413_vm9, %v414_v38, %v1260_v23  ;;  %vm492_vm10 = vcmp.lt.s32.totalorder %v473_v24, 1 }
  0xb9   : > { %v488_v48 = vor.u32 %v487_v39, %v486_v37  ;;  %vm495_vm11 = vcmp.lt.s32.totalorder %v473_v24, 4  ;;  %v416_v47 = vadd.s32 %v415_v41, %v411_v28  ;;  %vm494_vm12 = vcmp.lt.s32.totalorder %v473_v24, 3 }
  0xba   : > { %v491_v49 = vor.u32 %v490_v46, %v489_v40  ;;  %v497_v50 = vsel %vm495_vm11, %v485_v45, 2102212464  ;;  %v476_v51 = vshrl.u32 %v1098_v43, %v475_v26  ;;  %v500_v52 = vsel %vm492_vm10, %v479_v42, %v482_v44 }
  0xbb   : > { %v501_v54 = vsel %vm495_vm11, %v488_v48, 920167782  ;;  %v504_v55 = vsel %vm492_vm10, %v482_v44, %v485_v45  ;;  %v417_v56 = vadd.s32 536870912, %v416_v47  ;;  %vm493_vm13 = vcmp.lt.s32.totalorder %v473_v24, 2 }
  0xbc   : > { %v502_v53 = vsel %vm494_vm12, %v485_v45, %v501_v54  ;;  %v505_v57 = vsel %vm495_vm11, %v491_v49, 1326507024  ;;  %v496_v58 = vsel %vm492_vm10, %v476_v51, %v479_v42  ;;  %v498_v59 = vsel %vm494_vm12, %v482_v44, %v497_v50 }
  0xbd   : > { %v503_v60 = vsel %vm493_vm13, %v500_v52, %v502_v53  ;;  %v506_v61 = vsel %vm494_vm12, %v488_v48, %v505_v57  ;;  %v418_v62 = vshrl.u32 %v417_v56, 30  ;;  %v499_v4 = vsel %vm493_vm13, %v496_v58, %v498_v59 }
  0xbe   : > { %v507_v63 = vsel %vm493_vm13, %v504_v55, %v506_v61  ;;  %v1270_v0 = vmul.u32.u64.low %v508_v27, %v503_v60  ;;  %v1271_v1 = vmul.u32.u64.high %v508_v27, %v503_v60, %v1270_v0  ;;  %v515_v8 = vmul.u32 %v508_v27, %v499_v4 }
  0xbf   : > { %v1273_v2 = vmul.u32.u64.low %v508_v27, %v507_v63  ;;  %v1274_v3 = vmul.u32.u64.high %v508_v27, %v507_v63, %v1273_v2  ;;  %v419_v43 = vshll.u32 %v418_v62, 30  ;;  %v412_v23 = vadd.s32 %v1259_v22, %v1256_v20 }
  0xc0   : > { %v518_v7 = vadd.s32 1, %v1271_v1  ;;  %v442_v45 = vsub.s32 4, %v418_v62  ;;  %vm1289_vm4 = vcmp.le.f32.partialorder %v460_v36, 0.7853982  ;;  %vm448_vm8 = vweird.f32 %v1232_v21 }
  0xc1   : > { %v420_v6 = vsub.s32 %v416_v47, %v419_v43  ;;  %vm517_vm14 = vc.u32 %v1274_v3, %v1270_v0  ;;  %v516_v20 = vadd.s32 %v1270_v0, %v1274_v3  ;;  %vm552_vm12 = vweird.f32 %v1236_v29 }
  0xc2   : > { %v519_v10 = vsel %vm517_vm14, %v518_v7, %v1271_v1  ;;  %v443_v51 = vsel %vm358_vm1, %v442_v45, %v418_v62  ;;  %vm604_vm13 = vcmask 523264  }
  0xc3   : > { %v422_v9 = vsub.s32 0, %v420_v6  ;;  %v520_v11 = vadd.s32 %v519_v10, %v515_v8  ;;  %v445_v53 = vsel %vm357_vm2, 0, %v443_v51 }
  0xc4   : > { %v449_v59 = vadd.s32 3, %v445_v53 }
  0xc5   : > { %v864_v12 = vmin.u32 %v422_v9, %v420_v6  ;;  %v521_v13 = vadd.s32 536870912, %v520_v11 }
  0xc6   : > { %v450_v0 = vand.u32 3, %v449_v59 }
  0xc7   : > { %v424_v14 = vclz %v864_v12  ;;  %v522_v15 = vshrl.u32 %v521_v13, 30 }
  0xc8   : > { %vm455_vm5 = vcmp.eq.s32.totalorder %v450_v0, 2  ;;  %vm452_vm6 = vcmp.eq.s32.totalorder %v450_v0, 0  ;;  %vm451_vm7 = vcmp.lt.s32.totalorder %v450_v0, 2 }
  0xc9   : > { %v865_v16 = vadd.s32 4294967294, %v424_v14  ;;  %v523_v17 = vshll.u32 %v522_v15, 30  ;;  %v546_v61 = vsub.s32 4, %v522_v15 }
  0xcb   : > { %vm866_vm15 = vcmp.lt.s32.totalorder %v865_v16, 0  ;;  %v524_v19 = vsub.s32 %v520_v11, %v523_v17  ;;  %v547_v1 = vsel %vm462_vm3, %v546_v61, %v522_v15 }
  0xcc   : > { %v427_v18 = vsel %vm866_vm15, 0, %v865_v16  ;;  %v549_v7 = vsel %vm1289_vm4, 0, %v547_v1 }
  0xcd   : > { %v428_v24 = vsub.s32 32, %v427_v18  ;;  %v432_v26 = vsub.s32 4294967266, %v427_v18  ;;  %v526_v27 = vsub.s32 0, %v524_v19  ;;  %v429_v28 = vshll.u32 %v420_v6, %v427_v18 }
  0xce   : > { %v553_v10 = vadd.s32 3, %v549_v7 }
  0xcf   : > { %v430_v30 = vshrl.u32 %v412_v23, %v428_v24  ;;  %v433_v31 = vadd.s32 127, %v432_v26  ;;  %v868_v32 = vmin.u32 %v526_v27, %v524_v19  ;;  %v1007_v26 = vld [vmem:[%s1393_s6 + $0x8] sm:$0xff]   ;;  %v1009_v27 = vld [vmem:[%s1393_s6 + $0x18] sm:$0xff]  }
  0xd0   : > { %v554_v12 = vand.u32 3, %v553_v10 }
  0xd1   : > { %v431_v33 = vor.u32 %v430_v30, %v429_v28  ;;  %v434_v34 = vshll.u32 %v433_v31, 23  ;;  %v528_v35 = vclz %v868_v32  ;;  %v1010_v28 = vld [vmem:[%s1393_s6 + $0x20] sm:$0xff]   ;;  %v1011_v30 = vld [vmem:[%s1393_s6 + $0x28] sm:$0xff]   ;;  %v1012_v31 = vld [vmem:[%s1393_s6 + $0x30] sm:$0xff]  }
  0xd2   : > { %vm559_vm9 = vcmp.eq.s32.totalorder %v554_v12, 2  ;;  %vm556_vm10 = vcmp.eq.s32.totalorder %v554_v12, 0  ;;  %vm555_vm11 = vcmp.lt.s32.totalorder %v554_v12, 2  ;;  %v1013_v32 = vld [vmem:[%s1393_s6 + $0x38] sm:$0xff]  }
  0xd3   : > { %v435_v37 = vor.u32 4788187, %v434_v34  ;;  %v869_v38 = vadd.s32 4294967294, %v528_v35  ;;  %v438_v40 = vcvt.s32.f32 %v431_v33  ;;  %v871_v33 = vld [vmem:[%s1392_s5] ss:$0 sm:$0xff] }
  0xd5   : > { %v436_v39 = vand.u32 2147483647, %v435_v37  ;;  %vm870_vm0 = vcmp.lt.s32.totalorder %v869_v38, 0 }
  0xd6   : > { %v531_v44 = vsel %vm870_vm0, 0, %v869_v38 }
  0xd7   : > { %v439_v42 = vmul.f32 %v438_v40, %v436_v39  ;;  %v532_v22 = vsub.s32 32, %v531_v44  ;;  %v536_v46 = vsub.s32 4294967266, %v531_v44  ;;  %v533_v48 = vshll.u32 %v524_v19, %v531_v44 }
  0xd9   : > { %v440_v41 = vxor.u32 2147483648, %v439_v42  ;;  %v534_v47 = vshrl.u32 %v516_v20, %v532_v22  ;;  %v537_v49 = vadd.s32 127, %v536_v46 }
  0xdb   : > { %v441_v50 = vsel %vm358_vm1, %v440_v41, %v439_v42  ;;  %v535_v54 = vor.u32 %v534_v47, %v533_v48  ;;  %v538_v55 = vshll.u32 %v537_v49, 23 }
  0xdc   : > { %v444_v52 = vsel %vm357_vm2, %v1232_v21, %v441_v50  ;;  %v1006_v21 = vld [vmem:[%s1393_s6] sm:$0xff]  }
  0xdd   : > { %1014 = vcosq.f32 %v444_v52  ;;  %v539_v56 = vor.u32 4788187, %v538_v55  ;;  %v542_v58 = vcvt.s32.f32 %v535_v54  ;;  %921 = vmatpush3.bf16.msra.mxu1 %v1006_v21  ;;  %v879_v50 = vld [vmem:[%s1394_s7] ss:$0 sm:$0xff] }
  0xde   : > { %1016 = vsinq.f32 %v444_v52  ;;  %922 = vmatprep.subr.bf16.mxu1 %v1096_v5 }
  0xdf   : > { %v540_v57 = vand.u32 2147483647, %v539_v56 }
  0xe1   : > { %v543_v60 = vmul.f32 %v542_v58, %v540_v57  ;;  %923 = vmatpush3.bf16.msra.mxu1 %v1007_v26 }
  0xe2   : > { %924 = vmatprep.subr.bf16.mxu1 %v1096_v5 }
  0xe3   : > { %v544_v63 = vxor.u32 2147483648, %v543_v60 }
  0xe5   : > { %v545_v62 = vsel %vm462_vm3, %v544_v63, %v543_v60 }
  0xe6   : > { %v548_v3 = vsel %vm1289_vm4, %v1236_v29, %v545_v62  ;;  %v1008_v29 = vld [vmem:[%s1393_s6 + $0x10] sm:$0xff]  }
  0xe7   : > { %v1015_v2 = vpop.eup %1014  ;;  %1018 = vcosq.f32 %v548_v3  ;;  %925 = vmatpush3.bf16.msra.mxu1 %v1008_v29 }
  0xe8   : > { %v1017_v43 = vpop.eup %1016  ;;  %v456_v4 = vxor.u32 2147483648, %v1015_v2  ;;  %1020 = vsinq.f32 %v548_v3  ;;  %926 = vmatprep.subr.bf16.mxu1 %v1096_v5 }
  0xe9   : > { %v453_v6 = vxor.u32 2147483648, %v1017_v43 }
  0xea   : > { %v457_v36 = vsel %vm455_vm5, %v456_v4, %v1017_v43 }
  0xeb   : > { %v454_v8 = vsel %vm452_vm6, %v1015_v2, %v453_v6  ;;  %927 = vmatpush3.bf16.msra.mxu1 %v1009_v27 }
  0xec   : > { %v458_v9 = vsel %vm451_vm7, %v454_v8, %v457_v36  ;;  %928 = vmatprep.subr.bf16.mxu1 %v1096_v5 }
  0xed   : > { %v459_v11 = vsel %vm448_vm8, nan, %v458_v9 }
  0xef   : > { %929 = vmatpush3.bf16.msra.mxu1 %v1010_v28 }
  0xf0   : > { %930 = vmatprep.subr.bf16.mxu1 %v1096_v5 }
  0xf1   : > { %v1019_v13 = vpop.eup %1018 }
  0xf2   : > { %v1021_v14 = vpop.eup %1020  ;;  %v560_v15 = vxor.u32 2147483648, %v1019_v13 }
  0xf3   : > { %v557_v16 = vxor.u32 2147483648, %v1021_v14  ;;  %931 = vmatpush3.bf16.msra.mxu1 %v1011_v30 }
  0xf4   : > { %v561_v17 = vsel %vm559_vm9, %v560_v15, %v1021_v14  ;;  %932 = vmatprep.subr.bf16.mxu1 %v1096_v5 }
  0xf5   : > { %v558_v18 = vsel %vm556_vm10, %v1019_v13, %v557_v16 }
  0xf6   : > { %v562_v19 = vsel %vm555_vm11, %v558_v18, %v561_v17 }
  0xf7   : > { %v563_v23 = vsel %vm552_vm12, nan, %v562_v19  ;;  %933 = vmatpush3.bf16.msra.mxu1 %v1012_v31 }
  0xf8   : > { %v564_v24 = vpack.c.bf16 %v563_v23, %v459_v11  ;;  %934 = vmatprep.subr.bf16.mxu1 %v1096_v5 }
  0xfa   : > { %917 = vmatmul.mubr.msk.bf16.vlgmr.msra.gmra.mrb[0].mxu0 %vm604_vm13, %v564_v24 }
  0xfb   : > { %935 = vmatpush3.bf16.msra.mxu1 %v1013_v32 }
 0x1cd   : > { %v642_v34 = vpop.f32.mrb[0].mxu0 }
 0x1ce   : > { %v643_v35 = vadd.f32 %v871_v33, %v642_v34  ;;  %v918_v37 = vpop.f32.mrb[1].mxu0 }
 0x1cf   : > { %v645_v38 = vpop.f32.mrb[2].mxu0 }
 0x1d0   : > { %v877_v39 = vmul.f32 -1.442695, %v643_v35  ;;  %v646_v40 = vadd.f32 %v871_v33, %v645_v38  ;;  %v919_v42 = vpop.f32.mrb[3].mxu0 }
 0x1d2   : > { %1022 = vpow2.f32 %v877_v39  ;;  %v878_v44 = vmul.f32 -1.442695, %v646_v40 }
 0x1d4   : > { %1024 = vpow2.f32 %v878_v44 }
 0x1dc   : > { %v1023_v45 = vpop.eup %1022 }
 0x1dd   : > { %v655_v20 = vadd.f32 1.0, %v1023_v45 }
 0x1de   : > { %v1025_v22 = vpop.eup %1024 }
 0x1df   : > { %1026 = vrcp.f32 %v655_v20  ;;  %v656_v5 = vadd.f32 1.0, %v1025_v22 }
 0x1e1   : > { %1028 = vrcp.f32 %v656_v5 }
 0x1e9   : > { %v1027_v46 = vpop.eup %1026 }
 0x1ea   : > { %v661_v48 = vmul.f32 %v1027_v46, %v643_v35 }
 0x1eb   : > { %v1029_v41 = vpop.eup %1028 }
 0x1ec   : > { %v662_v47 = vmul.f32 %v1029_v41, %v646_v40 }
 0x1ee   : > { %v663_v49 = vpack.c.bf16 %v662_v47, %v661_v48 }
 0x1f0   : > { %937 = vmatmul.mubr.bf16.vlgmr.msra.gmra.mrb[0].mxu1 %v663_v49 }
 0x2c3   : > { %v769_v51 = vpop.f32.mrb[0].mxu1 }
 0x2c4   : > { %v770_v52 = vadd.f32 %v879_v50, %v769_v51  ;;  %v938_v54 = vpop.f32.mrb[1].mxu1 }
 0x2c5   : > { %v772_v55 = vpop.f32.mrb[2].mxu1 }
 0x2c6   : > { %776 = vst [vmem:[%s299_s19] sm:$0xff] %v770_v52  ;;  %v773_v56 = vadd.f32 %v879_v50, %v772_v55  ;;  %v939_v53 = vpop.f32.mrb[3].mxu1 }
 0x2c8   : > { %777 = vst [vmem:[%s299_s19 + $0x8] sm:$0xff] %v773_v56 }
 0x2c9   : > { %1043 = shalt.err (!%p1040_p3)
}
 0x2ca   : > { %s1044_s12 = scalar_lea.hbm %s1344_s24, 256  ;;  %s1048_s19 = scalar_lea.hbm %s1395_s8, 512 }
 0x2cb   : > { %p1045_p4 = scmp.ne.s32.totalorder %s1344_s24, %s1044_s12  ;;  %p1049_p9 = scmp.lt.u32.totalorder %s1344_s24, %s1395_s8 }
 0x2cc   : > { %p1050_p10 = scmp.lt.u32.totalorder %s1048_s19, %s1044_s12  ;;  %p1052_p12 = scmp.lt.u32.totalorder %s1044_s12, %s1344_s24 }
 0x2cd   : > { %p1046_p7 = pnand %p1045_p4, %p1190_p5 }
 0x2ce   : > { %p1051_p11 = por %p1050_p10, %p1049_p9 }
 0x2cf   : > { %p1047_p8 = pneg %p1046_p7 }
 0x2d0   : > { %p1053_p13 = por %p1052_p12, %p1051_p11 }
 0x2d2   : > { %p1054_p0 = pnand %p1053_p13, %p1047_p8 }
 0x2d4   : > { %1057 = shalt.err (!%p1054_p0)
}
 0x2d5   : > { %s1105_s23 = smov 128   ;;  %s1106_s9 = smov 8  }
 0x2d6   : > { %948 = dma.vmem_to_hbm [thread:$0]  (%p1190_p5), %s1339_s20, 256, %s1344_s24, %s1346_s25, %s1105_s23, %s1105_s23, %s1106_s9  }
 0x2d7 PF: > { %p954_p1 = scmp.ge.s32.totalorder %s1092_s30, 2  ;;  %s807_s26 = sand.u32 1, %s1080_s27  }
 0x2d8   : > { %s808_s10 = scalar_lea.sflag [#allocation3], %s807_s26 }
 0x2d9   : > { %p951_p2 = pnand %p954_p1, %p1194_p6 }
 0x2db   : > { %1075 = dma.done.wait (!%p951_p2), %s808_s10, 256  }
 0x2dc   : > { %1077 = vsyncadd (!%p951_p2), %s808_s10, 4294967040  ;;  %p18_p3 = scmp.ge.s32.totalorder %s1177_s11, 4   ;;  %s1400_s27 = smov %s1084_s28 }
 0x2dd   : > { %s1401_s28 = smov %s1088_s29  ;;  %s1402_s29 = smov %s1188_s14 }
 0x2de   : > { %s1403_s30 = smov %s1177_s11  ;;  %20 = sbr.rel (!%p18_p3) target bundleno = 3 (0x3), region = 87 }
 0x2e5   :  { %813 = vsyncpa [#allocation3], 1 }
 0x2e6   :  { %815 = vsyncpa [#allocation3 + $0x1], 1 }

</bundles_post_ra>
